<compile_context>
chip_gen: v5e
topology: v5e:2x2
jax: 0.10.0
libtpu: 0.0.40
codegen_flags: <defaults>
</compile_context>

<pallas_src>
import functools

import jax
import jax.numpy as jnp
from jax.experimental import pallas as pl
from jax.experimental.pallas import tpu as pltpu


def _one_hot_kernel(x_ref, o_ref, *, num_classes: int):
    # x_ref: (tb, s) int32      o_ref: (tb, s*C) lane-dense
    tb, s = x_ref.shape
    C = num_classes
    x = x_ref[...]                                                   # (tb, s)
    # Small iota along the class axis only; broadcast in the compare.
    classes = jax.lax.broadcasted_iota(jnp.int32, (1, 1, C), 2)      # (1, 1, C)
    oh = (x[:, :, None] == classes).astype(o_ref.dtype)              # (tb, s, C)
    # Collapse the minor dims so the store hits a >=128-wide lane-dense block.
    o_ref[...] = oh.reshape(tb, s * C)


def _plan_tiles(B: int, S: int, C: int, out_bytes: int):
    """Pick (batch_tile, s_column_tile, vmem_limit_bytes).

    The VMEM budget accounts for double-buffered input/output blocks plus the
    lane-padded f32 temporary (C padded up to a multiple of 128) created by the
    in-kernel one-hot + reshape.
    """
    pad_c = -(-C // 128) * 128                      # C rounded up to 128 lanes

    try:
        info = pltpu.get_tpu_info()
        vmem_cap = int(getattr(info, "vmem_capacity_bytes", 64 << 20))
    except Exception:                               # CPU tracing / older jax
        vmem_cap = 64 << 20                         # v7x-safe fallback

    # Total working-set budget: stay comfortably inside v7x's 64 MiB physical.
    total_budget = (min(vmem_cap, 64 << 20) * 3) // 4

    # Bytes needed per *output element* in the working set:
    #   2x out block (double-buffered) + 2x in block (int32, 1 per C outputs)
    #   + padded f32 temporary (pad_c/C elements per output element).
    per_out_elem = 2.0 * out_bytes + 8.0 / C + 4.0 * pad_c / C
    out_block_budget = int(total_budget * out_bytes / per_out_elem)
    out_block_budget = max(min(out_block_budget, 16 << 20), 256 << 10)

    row_bytes = S * C * out_bytes
    if B <= 8:
        tb = B                                       # full-dim block (legal)
    else:
        tb = max(8, min((out_block_budget // row_bytes) // 8 * 8, (B // 8) * 8))

    cs = S                                           # s-columns per tile
    if tb * row_bytes > out_block_budget and S >= 256:
        # Even the minimum row tile overflows the budget: tile the column axis
        # in groups of whole class rows.  cs is a multiple of 128 so the input
        # block (tb, cs) and output block (tb, cs*C) both stay lane-aligned
        # and stores stay unmasked/lane-dense.
        tb = B if B <= 8 else 8
        cs = (out_block_budget // max(tb * C * out_bytes, 1)) // 128 * 128
        cs = int(max(128, min(cs, (S // 128) * 128)))
    # TODO(synk): if S*C is huge but S < 256 (enormous num_classes), a further
    # split along the class axis within a segment would be needed.

    out_blk = tb * cs * C * out_bytes
    in_blk = tb * cs * 4
    temp = tb * cs * pad_c * 4
    vmem_limit = 2 * (out_blk + in_blk) + temp + (4 << 20)
    vmem_limit = int(min(max(vmem_limit, 32 << 20), min(vmem_cap, 128 << 20)))
    return tb, cs, vmem_limit


def one_hot(x: jax.Array, num_classes: int, *, dtype=jnp.float32) -> jax.Array:
    """x: (B, ...) integer array -> (B, prod(rest)*num_classes) `dtype`,
    matching torch.nn.functional.one_hot(x, C).reshape(B, -1).float() when
    dtype=float32 (default).  Pass dtype=jnp.bfloat16 to halve HBM writeback
    if the consumer tolerates it."""
    x = x.astype(jnp.int32)
    B = x.shape[0]
    S = 1
    for d in x.shape[1:]:
        S *= d
    S = max(S, 1)
    C = int(num_classes)
    x2 = x.reshape(B, S)

    out_bytes = jnp.dtype(dtype).itemsize
    tb, cs, vmem_limit = _plan_tiles(B, S, C, out_bytes)
    grid = (pl.cdiv(B, tb), pl.cdiv(S, cs))

    cost = pl.CostEstimate(
        flops=B * S * C,
        transcendentals=0,
        bytes_accessed=B * S * 4 + B * S * C * out_bytes,
    )

    out = pl.pallas_call(
        functools.partial(_one_hot_kernel, num_classes=C),
        out_shape=jax.ShapeDtypeStruct((B, S * C), dtype),
        grid_spec=pltpu.PrefetchScalarGridSpec(
            num_scalar_prefetch=0,
            grid=grid,
            in_specs=[pl.BlockSpec((tb, cs), lambda i, j: (i, j))],
            out_specs=pl.BlockSpec((tb, cs * C), lambda i, j: (i, j)),
        ),
        compiler_params=pltpu.CompilerParams(
            # Both axes independent; "parallel" lets multi-TC parts shard them.
            # TODO(synk): on v7x, verify with a bundle dump that the batch axis
            # actually splits across the two TensorCores; if not, switch it to
            # pltpu.CORE_PARALLEL.
            dimension_semantics=("parallel", "parallel"),
            vmem_limit_bytes=vmem_limit,
        ),
        cost_estimate=cost,
    )(x2)
    return out


if __name__ == "__main__":
    key = jax.random.PRNGKey(0)

    # Shape consistent with the module's forward: (B, S) class indices.
    B, S, C = 2, 8, 32
    x = jax.random.randint(key, (B, S), minval=0, maxval=C, dtype=jnp.int32)
    out = jax.block_until_ready(one_hot(x, C))
    ref = jax.nn.one_hot(x, C, dtype=jnp.float32).reshape(B, -1)
    assert out.shape == (B, S * C), out.shape
    assert out.dtype == jnp.float32, out.dtype
    assert jnp.array_equal(out, ref), "mismatch vs reference one-hot (small)"

    # Batch divisible by 8 exercises the tiled/pipelined path.
    B2 = 16
    x2 = jax.random.randint(jax.random.PRNGKey(1), (B2, S),
                            minval=0, maxval=C, dtype=jnp.int32)
    out2 = jax.block_until_ready(one_hot(x2, C))
    ref2 = jax.nn.one_hot(x2, C, dtype=jnp.float32).reshape(B2, -1)
    assert jnp.array_equal(out2, ref2), "mismatch vs reference one-hot (tiled)"

    # Batch NOT a multiple of 8 exercises the cdiv grid + masked trailing block
    # (previously a single whole-array block / potential VMEM cliff).
    B3 = 20
    x3 = jax.random.randint(jax.random.PRNGKey(2), (B3, S),
                            minval=0, maxval=C, dtype=jnp.int32)
    out3 = jax.block_until_ready(one_hot(x3, C))
    ref3 = jax.nn.one_hot(x3, C, dtype=jnp.float32).reshape(B3, -1)
    assert jnp.array_equal(out3, ref3), "mismatch vs reference one-hot (masked)"

    print("KERNEL_OK")
</pallas_src>

<mosaic_0001>
module attributes {stable_mosaic.version = 11 : i64} {
  func.func @_one_hot_kernel(%arg0: i32, %arg1: i32, %arg2: memref<2x8xi32, #tpu.memory_space<vmem>>, %arg3: memref<2x256xf32, #tpu.memory_space<vmem>>) attributes {dimension_semantics = [#tpu.dimension_semantics<parallel>, #tpu.dimension_semantics<parallel>], iteration_bounds = array<i64: 1, 1>, scalar_prefetch = 0 : i64, scratch_operands = 0 : i64, tpu.core_type = #tpu.core_type<tc>, window_params = [{transform_indices = @transform_0, window_bounds = array<i64: 2, 8>}, {transform_indices = @transform_1, window_bounds = array<i64: 2, 256>}]} {
    %c0 = arith.constant 0 : index
    %c0_0 = arith.constant 0 : index
    %0 = vector.load %arg2[%c0, %c0_0] : memref<2x8xi32, #tpu.memory_space<vmem>>, vector<2x8xi32>
    %1 = tpu.iota {dimensions = array<i32: 2>} : vector<1x1x32xi32>
    %2 = vector.shape_cast %0 : vector<2x8xi32> to vector<2x8x1xi32>
    %3 = vector.broadcast %2 : vector<2x8x1xi32> to vector<2x8x32xi32>
    %4 = vector.broadcast %1 : vector<1x1x32xi32> to vector<2x8x32xi32>
    %5 = arith.cmpi eq, %3, %4 : vector<2x8x32xi32>
    %6 = arith.extui %5 : vector<2x8x32xi1> to vector<2x8x32xi32>
    %7 = arith.sitofp %6 : vector<2x8x32xi32> to vector<2x8x32xf32>
    %8 = vector.shape_cast %7 : vector<2x8x32xf32> to vector<2x256xf32>
    %c0_1 = arith.constant 0 : index
    %c0_2 = arith.constant 0 : index
    %9 = vector.load %arg3[%c0_1, %c0_2] : memref<2x256xf32, #tpu.memory_space<vmem>>, vector<2x256xf32>
    tpu.vector_store %arg3[%c0_1, %c0_2], %8 {strides = array<i32>} : memref<2x256xf32, #tpu.memory_space<vmem>>, vector<2x256xf32>,
    return
  }
  func.func @transform_0(%arg0: i32, %arg1: i32) -> (i32, i32) {
    %c0_i32 = arith.constant 0 : i32
    return %arg0, %arg1 : i32, i32
  }
  func.func @transform_1(%arg0: i32, %arg1: i32) -> (i32, i32) {
    %c0_i32 = arith.constant 0 : i32
    return %arg0, %arg1 : i32, i32
  }
}

</mosaic_0001>

<bundles_post_ra>
// kernel: tpu_custom_call.1
= control target key start
LH: loop header
LB: loop body
LE: loop exit
PB: predicated region body
PF: predicated region fallthrough
CT: control target
= control target key end

     0   :  { %6 = vsyncpa [#allocation3], 0  ;;  %s268_s0 = inlined_call_operand.hbm [shape: s32[2,8], index: 0, kind: input, shape index: {}]   ;;  %s269_s1 = inlined_call_operand.hbm [shape: f32[2,256], index: 1, kind: output, shape index: {}]  }
   0x1   :  { %7 = vsyncpa [#allocation4], 0  ;;  %s13_s8 = sshll.u32 %s268_s0, 4  ;;  %s234_s9 = smov [#allocation2]   ;;  %s14_s8 = int_to_ptr.hbm [resolvable:$true] %s13_s8 }
   0x2   :  { %s15_s10 = sshll.u32 %s234_s9, 4  ;;  %s16_s10 = int_to_ptr.vmem [resolvable:$true] %s15_s10 }
   0x3   :  { %18 = dma.hbm_to_vmem [thread:$0]  %s14_s8, 32, %s16_s10, [#allocation3]  }
   0x4   :  { %230 = dma.done.wait [#allocation3], 32  }
   0x5   :  { %231 = vsyncadd [#allocation3], 4294967264  ;;  %v24_v0 = vlaneseq  ;;  %v23_v2 = vld [vmem:[#allocation2] sm:$0x3]  ;;  %v235_v6 = vmov 1983009808  }
   0x6   :  { %v33_v3 = vperm.slane %v23_v2, 1  ;;  %v26_v4 = vperm.slane %v23_v2, 0  ;;  %v50_v7 = vunpack.c.l.s4 %v235_v6  ;;  %v236_v9 = vmov 0.0   ;;  %s238_s0 = smov 32   ;;  %s239_s11 = smov 96  }
   0x7   :  { %v28_v1 = vshrl.u32 %v24_v0, 7  ;;  %v25_v5 = vand.u32 127, %v24_v0  ;;  %vm47_vm1 = vcmask 1047556   ;;  %v237_v13 = vmov 1934713408   ;;  %s240_s12 = smov 64  }
   0x8   :  { %v51_v11 = vunpack.c.0.s8 %v50_v7  ;;  %v72_v14 = vunpack.c.l.s4 %v237_v13  ;;  %vm123_vm3 = vcmask 261120   ;;  %vm125_vm4 = vcmask 523264   ;;  %s241_s13 = smov [#allocation5]   ;;  %s146_s17 = sshll.u32 %s269_s1, 4  ;;  %s147_s17 = int_to_ptr.hbm [resolvable:$true] %s146_s17 }
   0x9   :  { %166 = vset.pattern.permute.xlu0 %v28_v1  ;;  %vm127_vm5 = vcmask 785408   ;;  %s144_s14 = sshll.u32 %s241_s13, 4  ;;  %vm135_vm6 = vcmask 1041408   ;;  %s145_s14 = int_to_ptr.vmem [resolvable:$true] %s144_s14 }
   0xa   :  { %v73_v20 = vunpack.c.0.s8 %v72_v14 }
  0x11   :  { %38 = vperm.xlu0 %166, %v33_v3  }
  0x19   :  { %31 = vperm.xlu0 %166, %v26_v4  }
  0x83   :  { %v39_v8 = vpop.permute.xlu0 %38 }
  0x84   :  { %vm41_vm0 = vcmp.eq.s32.totalorder %v39_v8, %v25_v5 }
  0x85   :  { %v157_v10 = vsel %vm41_vm0, 1.0, %v236_v9 }
  0x86   :  { %v57_v12 = vrot.slane %v157_v10, 4  ;;  %v62_v16 = vperm.slane %v157_v10, %v51_v11 }
  0x88   :  { %v58_v15 = vsel %vm47_vm1, 0.0, %v57_v12  ;;  %v67_v21 = vrot.slane %v62_v16, 4 }
  0x89   :  { %v66_v18 = vperm.slane %v58_v15, %v51_v11 }
  0x8b   :  { %v32_v17 = vpop.permute.xlu0 %31  ;;  %v79_v27 = vrot.slane %v66_v18, 4 }
  0x8c   :  { %vm40_vm2 = vcmp.eq.s32.totalorder %v32_v17, %v25_v5 }
  0x8d   :  { %v156_v19 = vsel %vm40_vm2, 1.0, %v236_v9 }
  0x8e   :  { %v46_v22 = vrot.slane %v156_v19, 4  ;;  %v52_v23 = vperm.slane %v156_v19, %v51_v11 }
  0x90   :  { %v48_v24 = vsel %vm47_vm1, 0.0, %v46_v22  ;;  %v68_v25 = vsel %vm47_vm1, %v67_v21, %v52_v23  ;;  %v69_v26 = vrot.slane %v52_v23, 4 }
  0x91   :  { %v56_v28 = vperm.slane %v48_v24, %v51_v11  ;;  %v74_v29 = vperm.slane %v68_v25, %v73_v20 }
  0x92   :  { %v70_v30 = vsel %vm47_vm1, %v62_v16, %v69_v26 }
  0x93   :  { %v81_v31 = vrot.slane %v56_v28, 4  ;;  %v80_v32 = vsel %vm47_vm1, %v79_v27, %v56_v28  ;;  %v78_v33 = vperm.slane %v70_v30, %v73_v20  ;;  %v91_v35 = vrot.slane %v74_v29, 4 }
  0x94   :  { %v86_v34 = vperm.slane %v80_v32, %v73_v20 }
  0x95   :  { %v82_v36 = vsel %vm47_vm1, %v66_v18, %v81_v31  ;;  %v93_v39 = vrot.slane %v78_v33, 4  ;;  %v92_v40 = vsel %vm47_vm1, 0.0, %v91_v35 }
  0x96   :  { %v95_v37 = vrot.slane %v86_v34, 4  ;;  %v90_v38 = vperm.slane %v82_v36, %v73_v20 }
  0x97   :  { %v94_v44 = vsel %vm47_vm1, 0.0, %v93_v39 }
  0x98   :  { %v96_v41 = vsel %vm47_vm1, 0.0, %v95_v37  ;;  %v97_v42 = vrot.slane %v90_v38, 4  ;;  %v172_v47 = vpack.i.bf16 %v78_v33, %v90_v38 }
  0x99   :  { %v167_v43 = vpack.i.bf16 %v92_v40, %v96_v41 }
  0x9a   :  { %v98_v45 = vsel %vm47_vm1, 0.0, %v97_v42 }
  0x9b   :  { %168 = vrot.lane.b32.xlu1 %v167_v43, %s238_s0  ;;  %v177_v46 = vpack.i.bf16 %v94_v44, %v98_v45 }
  0x9d   :  { %178 = vrot.lane.b32.xlu2 %v177_v46, %s239_s11 }
  0xa3   :  { %173 = vrot.lane.b32.xlu1 %v172_v47, %s240_s12 }
  0xf7   :  { %v179_v51 = vpop.permute.xlu2 %178 }
  0xf8   :  { %v180_v55 = vunpack.i.l.bf16 %v179_v51  ;;  %v181_v60 = vunpack.i.h.bf16 %v179_v51 }
 0x10d   :  { %v169_v48 = vpop.permute.xlu1 %168 }
 0x10e   :  { %v171_v49 = vunpack.i.h.bf16 %v169_v48  ;;  %v170_v50 = vunpack.i.l.bf16 %v169_v48 }
 0x110   :  { %v124_v56 = vsel %vm123_vm3, %v74_v29, %v171_v49  ;;  %v129_v57 = vsel %vm123_vm3, %v86_v34, %v170_v50 }
 0x115   :  { %v174_v52 = vpop.permute.xlu1 %173 }
 0x116   :  { %v176_v53 = vunpack.i.h.bf16 %v174_v52  ;;  %v175_v54 = vunpack.i.l.bf16 %v174_v52 }
 0x118   :  { %v126_v58 = vsel %vm125_vm4, %v124_v56, %v176_v53  ;;  %v130_v59 = vsel %vm125_vm4, %v129_v57, %v175_v54 }
 0x119   :  { %v131_v61 = vsel %vm127_vm5, %v130_v59, %v180_v55  ;;  %v128_v63 = vsel %vm127_vm5, %v126_v58, %v181_v60 }
 0x11a   :  { %v134_v62 = vrot.slane %v131_v61, 6 }
 0x11c   :  { %v136_v0 = vsel %vm135_vm6, %v128_v63, %v134_v62 }
 0x11d   :  { %138 = vst [vmem:[#allocation5] sm:$0xf] %v136_v0 }
 0x11e   :  { %149 = dma.vmem_to_hbm [thread:$0]  %s145_s14, 64, %s147_s17, [#allocation4]  }
 0x11f   :  { %232 = dma.done.wait [#allocation4], 64  }
 0x120   :  { %233 = vsyncadd [#allocation4], 4294967232 }
 0x121   :  { %154 = vsyncpa [#allocation3], 1 }
 0x122   :  { %155 = vsyncpa [#allocation4], 1 }

</bundles_post_ra>
